<compile_context>
chip_gen: v6e
topology: v6e:2x2x1
jax: 0.10.0
libtpu: 0.0.40
codegen_flags: <defaults>
</compile_context>

<pallas_src>
import functools

import jax
import jax.numpy as jnp
from jax import lax
from jax.experimental import pallas as pl
from jax.experimental.pallas import tpu as pltpu

EPS = 1e-5
LANE = 128


# --------------------------------- kernels ---------------------------------

def _sum_stats(v):
    """(rows, C) f32 -> (2, C): row-sum and row-sum-of-squares."""
    return jnp.concatenate([jnp.sum(v, axis=0, keepdims=True),
                            jnp.sum(v * v, axis=0, keepdims=True)], axis=0)


def stage_a_kernel(*refs, downsample):
    """conv1 (1x1 as GEMM) [+ projection shortcut conv] + per-tile BN stats."""
    if downsample:
        x_ref, w1_ref, ws_ref, y1_ref, s1_ref, zs_ref, ss_ref = refs
    else:
        x_ref, w1_ref, y1_ref, s1_ref = refs
    x = x_ref[...]                                           # bf16 (tr, Cin_p)
    y = jnp.dot(x, w1_ref[...], preferred_element_type=jnp.float32)
    y1_ref[...] = y.astype(y1_ref.dtype)
    s1_ref[0] = _sum_stats(y)
    if downsample:
        z = jnp.dot(x, ws_ref[...], preferred_element_type=jnp.float32)
        zs_ref[...] = z.astype(zs_ref.dtype)
        ss_ref[0] = _sum_stats(z)


def stage_b_kernel(y1_ref, sc1_ref, sh1_ref, w2_ref, m_in_ref, m_out_ref,
                   y2_ref, s2_ref, *, ho, wo):
    """bn1+relu fused into the 3x3 conv: 9 row-shifted GEMMs on a halo image."""
    wp = wo + 2
    pw = ho * wp
    x = y1_ref[0].astype(jnp.float32)                        # (p_alloc, Cb_p)
    xn = jnp.maximum(x * sc1_ref[...] + sh1_ref[...], 0.0)   # bn1 + relu
    xn = xn * m_in_ref[...]                                  # restore conv zero-padding
    xb = xn.astype(jnp.bfloat16)
    acc = jnp.zeros((pw, xb.shape[1]), jnp.float32)
    for t in range(9):                                       # unrolled 9-tap reduction
        off = (t // 3) * wp + (t % 3)
        acc = acc + jnp.dot(xb[off:off + pw, :], w2_ref[t],
                            preferred_element_type=jnp.float32)
    y2_ref[0] = acc.astype(y2_ref.dtype)
    accv = acc * m_out_ref[...]                              # drop wrap-around columns
    s2_ref[0] = _sum_stats(accv)


def stage_c_kernel(y2_ref, sc2_ref, sh2_ref, w3_ref, z3_ref, s3_ref, *,
                   tile_rows, n_valid, need_row_mask):
    """bn2+relu fused into conv3 (1x1 as GEMM) + per-tile BN stats."""
    y = y2_ref[...].astype(jnp.float32)
    yn = jnp.maximum(y * sc2_ref[...] + sh2_ref[...], 0.0)
    if need_row_mask:  # zero the padded rows of the last tile (keep stats global)
        row = (lax.broadcasted_iota(jnp.int32, (tile_rows, 1), 0)
               + pl.program_id(0) * tile_rows)
        yn = jnp.where(row < n_valid, yn, 0.0)
    z = jnp.dot(yn.astype(jnp.bfloat16), w3_ref[...],
                preferred_element_type=jnp.float32)
    z3_ref[...] = z.astype(z3_ref.dtype)
    s3_ref[0] = _sum_stats(z)


def stage_d_kernel(z3_ref, sc3_ref, sh3_ref, short_ref, *rest, downsample):
    """bn3 + shortcut (bn_s projection or identity) + add + relu."""
    if downsample:
        scs_ref, shs_ref, o_ref = rest
        short = short_ref[...].astype(jnp.float32) * scs_ref[...] + shs_ref[...]
    else:
        (o_ref,) = rest
        short = short_ref[...].astype(jnp.float32)
    main = z3_ref[...].astype(jnp.float32) * sc3_ref[...] + sh3_ref[...]
    o_ref[...] = jnp.maximum(main + short, 0.0).astype(o_ref.dtype)


# --------------------------------- wrapper ---------------------------------

def _rup(v, m):
    return (v + m - 1) // m * m


def _pad2d(a, rows, cols):
    return jnp.pad(a, ((0, rows - a.shape[0]), (0, cols - a.shape[1])))


def _bn_affine(stats, gamma, beta, count, c_pad):
    """Fold global BN stats (sum/sumsq) into per-channel scale/shift, (1,c_pad)."""
    s = jnp.sum(stats.astype(jnp.float32), axis=0)           # (2, c_pad)
    mean = s[0] / count
    var = jnp.maximum(s[1] / count - mean * mean, 0.0)
    g = jnp.pad(gamma.astype(jnp.float32), (0, c_pad - gamma.shape[0]))
    b = jnp.pad(beta.astype(jnp.float32), (0, c_pad - beta.shape[0]))
    scale = g * lax.rsqrt(var + EPS)
    shift = b - mean * scale
    return scale.reshape(1, c_pad), shift.reshape(1, c_pad)


def bottleneck_forward(x_nchw, raw):
    stride = raw["stride"]
    downsample = raw["downsample"]

    x = jnp.transpose(x_nchw, (0, 2, 3, 1)).astype(jnp.float32)    # NHWC
    B, H, W, Cin = x.shape
    xs = x[:, ::stride, ::stride, :]                               # 1x1-conv stride
    _, Ho, Wo, _ = xs.shape
    N = B * Ho * Wo
    Cb = raw["w1"].shape[0]
    Cout = raw["w3"].shape[0]
    if not downsample:
        assert stride == 1 and Cin == Cout, \
            "identity shortcut requires stride == 1 and c_in == c_out"

    Cin_p, Cb_p, Cout_p = _rup(Cin, LANE), _rup(Cb, LANE), _rup(Cout, LANE)

    tr = 256 if N >= 256 else _rup(N, 8)          # row tile (sublane multiple)
    nt = -(-N // tr)
    n_pad = nt * tr

    xs_flat = jnp.pad(xs.reshape(N, Cin),
                      ((0, n_pad - N), (0, Cin_p - Cin))).astype(jnp.bfloat16)

    # Re-layout PyTorch (O, I, kh, kw) weights into lane-padded bf16 GEMM mats.
    w1_p = _pad2d(jnp.transpose(raw["w1"][:, :, 0, 0], (1, 0)),
                  Cin_p, Cb_p).astype(jnp.bfloat16)
    w2_m = jnp.transpose(raw["w2"], (2, 3, 1, 0)).reshape(9, Cb, Cb)
    w2_p = jnp.pad(w2_m, ((0, 0), (0, Cb_p - Cb), (0, Cb_p - Cb))
                   ).astype(jnp.bfloat16)
    w3_p = _pad2d(jnp.transpose(raw["w3"][:, :, 0, 0], (1, 0)),
                  Cb_p, Cout_p).astype(jnp.bfloat16)

    par = pltpu.CompilerParams(dimension_semantics=("parallel",))

    # ---- stage A: conv1 (1x1, stride) [+ shortcut conv] + BN stats ----------
    in_specs = [pl.BlockSpec((tr, Cin_p), lambda i: (i, 0)),
                pl.BlockSpec((Cin_p, Cb_p), lambda i: (0, 0))]
    out_shape = [jax.ShapeDtypeStruct((n_pad, Cb_p), jnp.bfloat16),
                 jax.ShapeDtypeStruct((nt, 2, Cb_p), jnp.float32)]
    out_specs = [pl.BlockSpec((tr, Cb_p), lambda i: (i, 0)),
                 pl.BlockSpec((1, 2, Cb_p), lambda i: (i, 0, 0))]
    args = [xs_flat, w1_p]
    if downsample:
        ws_p = _pad2d(jnp.transpose(raw["ws"][:, :, 0, 0], (1, 0)),
                      Cin_p, Cout_p).astype(jnp.bfloat16)
        in_specs.append(pl.BlockSpec((Cin_p, Cout_p), lambda i: (0, 0)))
        out_shape += [jax.ShapeDtypeStruct((n_pad, Cout_p), jnp.bfloat16),
                      jax.ShapeDtypeStruct((nt, 2, Cout_p), jnp.float32)]
        out_specs += [pl.BlockSpec((tr, Cout_p), lambda i: (i, 0)),
                      pl.BlockSpec((1, 2, Cout_p), lambda i: (i, 0, 0))]
        args.append(ws_p)

    res = pl.pallas_call(
        functools.partial(stage_a_kernel, downsample=downsample),
        out_shape=tuple(out_shape), grid=(nt,),
        in_specs=in_specs, out_specs=tuple(out_specs),
        compiler_params=par,
    )(*args)
    if downsample:
        y1_raw, st1, zs_raw, st_s = res
    else:
        y1_raw, st1 = res

    sc1, sh1 = _bn_affine(st1, raw["g1"], raw["b1"], N, Cb_p)

    # ---- stage B: bn1+relu fused into conv2 (3x3), per-image halo GEMMs -----
    wp = Wo + 2
    p_img = (Ho + 2) * wp                   # rows of one spatially padded image
    p_alloc = _rup(p_img + 2, 8)            # + tap-shift overrun, sublane aligned
    pw = Ho * wp                            # "wide" output rows per image

    y1_sp = jnp.pad(y1_raw[:N].reshape(B, Ho, Wo, Cb_p),
                    ((0, 0), (1, 1), (1, 1), (0, 0)))
    y1_wide = jnp.pad(y1_sp.reshape(B, p_img, Cb_p),
                      ((0, 0), (0, p_alloc - p_img), (0, 0)))

    ii = jnp.arange(p_alloc) // wp
    jj = jnp.arange(p_alloc) % wp
    m_in = ((ii >= 1) & (ii <= Ho) & (jj >= 1) & (jj <= Wo)
            ).astype(jnp.float32).reshape(p_alloc, 1)          # interior pixels
    m_out = ((jnp.arange(pw) % wp) < Wo
             ).astype(jnp.float32).reshape(pw, 1)              # valid out columns

    y2_wide, st2 = pl.pallas_call(
        functools.partial(stage_b_kernel, ho=Ho, wo=Wo),
        out_shape=(jax.ShapeDtypeStruct((B, pw, Cb_p), jnp.bfloat16),
                   jax.ShapeDtypeStruct((B, 2, Cb_p), jnp.float32)),
        grid=(B,),
        in_specs=[pl.BlockSpec((1, p_alloc, Cb_p), lambda b: (b, 0, 0)),
                  pl.BlockSpec((1, Cb_p), lambda b: (0, 0)),
                  pl.BlockSpec((1, Cb_p), lambda b: (0, 0)),
                  pl.BlockSpec((9, Cb_p, Cb_p), lambda b: (0, 0, 0)),
                  pl.BlockSpec((p_alloc, 1), lambda b: (0, 0)),
                  pl.BlockSpec((pw, 1), lambda b: (0, 0))],
        out_specs=(pl.BlockSpec((1, pw, Cb_p), lambda b: (b, 0, 0)),
                   pl.BlockSpec((1, 2, Cb_p), lambda b: (b, 0, 0))),
        compiler_params=par,
    )(y1_wide, sc1, sh1, w2_p, m_in, m_out)

    sc2, sh2 = _bn_affine(st2, raw["g2"], raw["b2"], N, Cb_p)

    # compact the wide conv2 output (drop the 2 wrap-around columns per row)
    y2_c = y2_wide.reshape(B, Ho, wp, Cb_p)[:, :, :Wo, :].reshape(N, Cb_p)
    y2_c = jnp.pad(y2_c, ((0, n_pad - N), (0, 0)))

    # ---- stage C: bn2+relu fused into conv3 (1x1) + BN stats ----------------
    z3_raw, st3 = pl.pallas_call(
        functools.partial(stage_c_kernel, tile_rows=tr, n_valid=N,
                          need_row_mask=(n_pad != N)),
        out_shape=(jax.ShapeDtypeStruct((n_pad, Cout_p), jnp.bfloat16),
                   jax.ShapeDtypeStruct((nt, 2, Cout_p), jnp.float32)),
        grid=(nt,),
        in_specs=[pl.BlockSpec((tr, Cb_p), lambda i: (i, 0)),
                  pl.BlockSpec((1, Cb_p), lambda i: (0, 0)),
                  pl.BlockSpec((1, Cb_p), lambda i: (0, 0)),
                  pl.BlockSpec((Cb_p, Cout_p), lambda i: (0, 0))],
        out_specs=(pl.BlockSpec((tr, Cout_p), lambda i: (i, 0)),
                   pl.BlockSpec((1, 2, Cout_p), lambda i: (i, 0, 0))),
        compiler_params=par,
    )(y2_c, sc2, sh2, w3_p)

    sc3, sh3 = _bn_affine(st3, raw["g3"], raw["b3"], N, Cout_p)

    # ---- stage D: bn3 + shortcut (bn_s or identity) + add + relu ------------
    in_specs = [pl.BlockSpec((tr, Cout_p), lambda i: (i, 0)),
                pl.BlockSpec((1, Cout_p), lambda i: (0, 0)),
                pl.BlockSpec((1, Cout_p), lambda i: (0, 0))]
    args = [z3_raw, sc3, sh3]
    if downsample:
        scs, shs = _bn_affine(st_s, raw["gs"], raw["bs"], N, Cout_p)
        in_specs += [pl.BlockSpec((tr, Cout_p), lambda i: (i, 0)),
                     pl.BlockSpec((1, Cout_p), lambda i: (0, 0)),
                     pl.BlockSpec((1, Cout_p), lambda i: (0, 0))]
        args += [zs_raw, scs, shs]
    else:
        in_specs.append(pl.BlockSpec((tr, Cin_p), lambda i: (i, 0)))
        args.append(xs_flat)                                   # identity shortcut

    out = pl.pallas_call(
        functools.partial(stage_d_kernel, downsample=downsample),
        out_shape=jax.ShapeDtypeStruct((n_pad, Cout_p), jnp.float32),
        grid=(nt,),
        in_specs=in_specs,
        out_specs=pl.BlockSpec((tr, Cout_p), lambda i: (i, 0)),
        compiler_params=par,
    )(*args)

    out = out[:N, :Cout].reshape(B, Ho, Wo, Cout)
    return jnp.transpose(out, (0, 3, 1, 2))                    # NCHW


# ------------------------------ params & ref ------------------------------

def init_params(key, c_in, c_out, c_b, stride, shortcut="B"):
    ks = jax.random.split(key, 12)

    def conv_w(k, cin, cout, kh, kw):
        std = (2.0 / (cin * kh * kw)) ** 0.5
        return std * jax.random.normal(k, (cout, cin, kh, kw), jnp.float32)

    def bn_p(kg, kb, c):
        gamma = 1.0 + 0.1 * jax.random.normal(kg, (c,), jnp.float32)
        beta = 0.1 * jax.random.normal(kb, (c,), jnp.float32)
        return gamma, beta

    downsample = (c_out != c_in) or (stride != 1)
    g1, b1 = bn_p(ks[3], ks[4], c_b)
    g2, b2 = bn_p(ks[5], ks[6], c_b)
    g3, b3 = bn_p(ks[7], ks[8], c_out)
    raw = dict(
        stride=stride, downsample=downsample,
        w1=conv_w(ks[0], c_in, c_b, 1, 1),
        w2=conv_w(ks[1], c_b, c_b, 3, 3),
        w3=conv_w(ks[2], c_b, c_out, 1, 1),
        g1=g1, b1=b1, g2=g2, b2=b2, g3=g3, b3=b3,
    )
    if downsample:
        gs, bs = bn_p(ks[10], ks[11], c_out)
        raw.update(ws=conv_w(ks[9], c_in, c_out, 1, 1), gs=gs, bs=bs)
    return raw


def reference_forward(x, raw):
    """Pure-JAX NCHW reference mirroring the PyTorch forward (training-mode BN)."""
    def conv(x, w, stride=1, pad=0):
        return lax.conv_general_dilated(
            x, w, (stride, stride), [(pad, pad), (pad, pad)],
            dimension_numbers=("NCHW", "OIHW", "NCHW"),
            precision=lax.Precision.HIGHEST)

    def bn(x, g, b):
        m = jnp.mean(x, axis=(0, 2, 3), keepdims=True)
        v = jnp.mean((x - m) ** 2, axis=(0, 2, 3), keepdims=True)
        return (x - m) * (g.reshape(1, -1, 1, 1) * lax.rsqrt(v + EPS)) \
            + b.reshape(1, -1, 1, 1)

    s = raw["stride"]
    out = jax.nn.relu(bn(conv(x, raw["w1"], s), raw["g1"], raw["b1"]))
    out = jax.nn.relu(bn(conv(out, raw["w2"], 1, 1), raw["g2"], raw["b2"]))
    out = bn(conv(out, raw["w3"]), raw["g3"], raw["b3"])
    if raw["downsample"]:
        sc = bn(conv(x, raw["ws"], s), raw["gs"], raw["bs"])
    else:
        sc = x
    return jax.nn.relu(out + sc)


# ----------------------------------- main -----------------------------------

if __name__ == "__main__":
    key = jax.random.PRNGKey(0)
    kx1, kp1, kx2, kp2 = jax.random.split(key, 4)

    # Test 1: downsampling bottleneck with projection ('B') shortcut.
    B, C_in, H, W = 2, 16, 16, 16
    C_b, C_out, stride = 8, 32, 2
    x1 = jax.random.normal(kx1, (B, C_in, H, W), jnp.float32)
    raw1 = init_params(kp1, C_in, C_out, C_b, stride)
    out1 = jax.block_until_ready(bottleneck_forward(x1, raw1))
    ref1 = reference_forward(x1, raw1)
    assert out1.shape == (B, C_out, H // stride, W // stride), out1.shape
    err1 = float(jnp.max(jnp.abs(out1 - ref1)))
    # bf16 activations/weights on the MXU -> looser tolerance than f32.
    if not jnp.allclose(out1, ref1, atol=1e-1, rtol=2e-2):
        raise ValueError(f"downsample block mismatch, max abs err={err1}")

    # Test 2: identity-shortcut bottleneck (stride 1, c_in == c_out, 2 row tiles).
    x2 = jax.random.normal(kx2, (2, 32, 16, 16), jnp.float32)
    raw2 = init_params(kp2, 32, 32, 8, 1)
    out2 = jax.block_until_ready(bottleneck_forward(x2, raw2))
    ref2 = reference_forward(x2, raw2)
    assert out2.shape == (2, 32, 16, 16), out2.shape
    err2 = float(jnp.max(jnp.abs(out2 - ref2)))
    if not jnp.allclose(out2, ref2, atol=1e-1, rtol=2e-2):
        raise ValueError(f"identity block mismatch, max abs err={err2}")

    print("KERNEL_OK")
</pallas_src>

<mosaic_0001>
module attributes {stable_mosaic.version = 11 : i64} {
  func.func @stage_a_kernel(%arg0: i32, %arg1: memref<128x128xbf16, #tpu.memory_space<vmem>>, %arg2: memref<128x128xbf16, #tpu.memory_space<vmem>>, %arg3: memref<128x128xbf16, #tpu.memory_space<vmem>>, %arg4: memref<128x128xbf16, #tpu.memory_space<vmem>>, %arg5: memref<1x2x128xf32, #tpu.memory_space<vmem>>, %arg6: memref<128x128xbf16, #tpu.memory_space<vmem>>, %arg7: memref<1x2x128xf32, #tpu.memory_space<vmem>>) attributes {dimension_semantics = [#tpu.dimension_semantics<parallel>], iteration_bounds = array<i64: 1>, scalar_prefetch = 0 : i64, scratch_operands = 0 : i64, tpu.core_type = #tpu.core_type<tc>, window_params = [{transform_indices = @transform_0, window_bounds = array<i64: 128, 128>}, {pipeline_mode = #tpu.pipeline_mode<synchronous>, transform_indices = @transform_1, window_bounds = array<i64: 128, 128>}, {pipeline_mode = #tpu.pipeline_mode<synchronous>, transform_indices = @transform_2, window_bounds = array<i64: 128, 128>}, {transform_indices = @transform_3, window_bounds = array<i64: 128, 128>}, {transform_indices = @transform_4, window_bounds = array<i64: 1, 2, 128>}, {transform_indices = @transform_5, window_bounds = array<i64: 128, 128>}, {transform_indices = @transform_6, window_bounds = array<i64: 1, 2, 128>}]} {
    %c0 = arith.constant 0 : index
    %c0_0 = arith.constant 0 : index
    %0 = vector.load %arg1[%c0, %c0_0] : memref<128x128xbf16, #tpu.memory_space<vmem>>, vector<128x128xbf16>
    %c0_1 = arith.constant 0 : index
    %c0_2 = arith.constant 0 : index
    %1 = vector.load %arg2[%c0_1, %c0_2] : memref<128x128xbf16, #tpu.memory_space<vmem>>, vector<128x128xbf16>
    %cst = arith.constant dense<0.000000e+00> : vector<128x128xf32>
    %2 = tpu.matmul %0, %1, %cst {dimension_numbers = #tpu.dot_dimension_numbers<[1], [0], [0], [1], [0, 0, 1, 1], [], []>} : vector<128x128xbf16>, vector<128x128xbf16>, vector<128x128xf32> -> vector<128x128xf32>
    %3 = arith.truncf %2 : vector<128x128xf32> to vector<128x128xbf16>
    %c0_3 = arith.constant 0 : index
    %c0_4 = arith.constant 0 : index
    %4 = vector.load %arg4[%c0_3, %c0_4] : memref<128x128xbf16, #tpu.memory_space<vmem>>, vector<128x128xbf16>
    tpu.vector_store %arg4[%c0_3, %c0_4], %3 {strides = array<i32>} : memref<128x128xbf16, #tpu.memory_space<vmem>>, vector<128x128xbf16>,
    %cst_5 = arith.constant dense<0.000000e+00> : vector<128xf32>
    %5 = vector.multi_reduction <add>, %2, %cst_5 [0] : vector<128x128xf32> to vector<128xf32>
    %6 = vector.shape_cast %5 : vector<128xf32> to vector<1x128xf32>
    %7 = arith.mulf %2, %2 : vector<128x128xf32>
    %cst_6 = arith.constant dense<0.000000e+00> : vector<128xf32>
    %8 = vector.multi_reduction <add>, %7, %cst_6 [0] : vector<128x128xf32> to vector<128xf32>
    %9 = vector.shape_cast %8 : vector<128xf32> to vector<1x128xf32>
    %10 = tpu.concatenate %6, %9 in 0 : vector<1x128xf32>, vector<1x128xf32> -> vector<2x128xf32>
    %c0_7 = arith.constant 0 : index
    %c0_8 = arith.constant 0 : index
    %c0_9 = arith.constant 0 : index
    %11 = vector.load %arg5[%c0_7, %c0_8, %c0_9] : memref<1x2x128xf32, #tpu.memory_space<vmem>>, vector<1x2x128xf32>
    %12 = vector.shape_cast %11 : vector<1x2x128xf32> to vector<2x128xf32>
    %13 = vector.shape_cast %10 : vector<2x128xf32> to vector<1x2x128xf32>
    tpu.vector_store %arg5[%c0_7, %c0_8, %c0_9], %13 {strides = array<i32>} : memref<1x2x128xf32, #tpu.memory_space<vmem>>, vector<1x2x128xf32>,
    %c0_10 = arith.constant 0 : index
    %c0_11 = arith.constant 0 : index
    %14 = vector.load %arg3[%c0_10, %c0_11] : memref<128x128xbf16, #tpu.memory_space<vmem>>, vector<128x128xbf16>
    %cst_12 = arith.constant dense<0.000000e+00> : vector<128x128xf32>
    %15 = tpu.matmul %0, %14, %cst_12 {dimension_numbers = #tpu.dot_dimension_numbers<[1], [0], [0], [1], [0, 0, 1, 1], [], []>} : vector<128x128xbf16>, vector<128x128xbf16>, vector<128x128xf32> -> vector<128x128xf32>
    %16 = arith.truncf %15 : vector<128x128xf32> to vector<128x128xbf16>
    %c0_13 = arith.constant 0 : index
    %c0_14 = arith.constant 0 : index
    %17 = vector.load %arg6[%c0_13, %c0_14] : memref<128x128xbf16, #tpu.memory_space<vmem>>, vector<128x128xbf16>
    tpu.vector_store %arg6[%c0_13, %c0_14], %16 {strides = array<i32>} : memref<128x128xbf16, #tpu.memory_space<vmem>>, vector<128x128xbf16>,
    %cst_15 = arith.constant dense<0.000000e+00> : vector<128xf32>
    %18 = vector.multi_reduction <add>, %15, %cst_15 [0] : vector<128x128xf32> to vector<128xf32>
    %19 = vector.shape_cast %18 : vector<128xf32> to vector<1x128xf32>
    %20 = arith.mulf %15, %15 : vector<128x128xf32>
    %cst_16 = arith.constant dense<0.000000e+00> : vector<128xf32>
    %21 = vector.multi_reduction <add>, %20, %cst_16 [0] : vector<128x128xf32> to vector<128xf32>
    %22 = vector.shape_cast %21 : vector<128xf32> to vector<1x128xf32>
    %23 = tpu.concatenate %19, %22 in 0 : vector<1x128xf32>, vector<1x128xf32> -> vector<2x128xf32>
    %c0_17 = arith.constant 0 : index
    %c0_18 = arith.constant 0 : index
    %c0_19 = arith.constant 0 : index
    %24 = vector.load %arg7[%c0_17, %c0_18, %c0_19] : memref<1x2x128xf32, #tpu.memory_space<vmem>>, vector<1x2x128xf32>
    %25 = vector.shape_cast %24 : vector<1x2x128xf32> to vector<2x128xf32>
    %26 = vector.shape_cast %23 : vector<2x128xf32> to vector<1x2x128xf32>
    tpu.vector_store %arg7[%c0_17, %c0_18, %c0_19], %26 {strides = array<i32>} : memref<1x2x128xf32, #tpu.memory_space<vmem>>, vector<1x2x128xf32>,
    return
  }
  func.func @transform_0(%arg0: i32) -> (i32, i32) {
    %c0_i32 = arith.constant 0 : i32
    %c0_i32_0 = arith.constant 0 : i32
    return %arg0, %c0_i32 : i32, i32
  }
  func.func @transform_1(%arg0: i32) -> (i32, i32) {
    %c0_i32 = arith.constant 0 : i32
    %c0_i32_0 = arith.constant 0 : i32
    %c0_i32_1 = arith.constant 0 : i32
    return %c0_i32, %c0_i32_0 : i32, i32
  }
  func.func @transform_2(%arg0: i32) -> (i32, i32) {
    %c0_i32 = arith.constant 0 : i32
    %c0_i32_0 = arith.constant 0 : i32
    %c0_i32_1 = arith.constant 0 : i32
    return %c0_i32, %c0_i32_0 : i32, i32
  }
  func.func @transform_3(%arg0: i32) -> (i32, i32) {
    %c0_i32 = arith.constant 0 : i32
    %c0_i32_0 = arith.constant 0 : i32
    return %arg0, %c0_i32 : i32, i32
  }
  func.func @transform_4(%arg0: i32) -> (i32, i32, i32) {
    %c0_i32 = arith.constant 0 : i32
    %c0_i32_0 = arith.constant 0 : i32
    %c0_i32_1 = arith.constant 0 : i32
    return %arg0, %c0_i32, %c0_i32_0 : i32, i32, i32
  }
  func.func @transform_5(%arg0: i32) -> (i32, i32) {
    %c0_i32 = arith.constant 0 : i32
    %c0_i32_0 = arith.constant 0 : i32
    return %arg0, %c0_i32 : i32, i32
  }
  func.func @transform_6(%arg0: i32) -> (i32, i32, i32) {
    %c0_i32 = arith.constant 0 : i32
    %c0_i32_0 = arith.constant 0 : i32
    %c0_i32_1 = arith.constant 0 : i32
    return %arg0, %c0_i32, %c0_i32_0 : i32, i32, i32
  }
}

</mosaic_0001>

<bundles_post_ra>
// kernel: tpu_custom_call.1
= control target key start
LH: loop header
LB: loop body
LE: loop exit
PB: predicated region body
PF: predicated region fallthrough
CT: control target
= control target key end

     0   :  { %12 = vsyncpa [#allocation3], 0  ;;  %s1332_s0 = inlined_call_operand.hbm [shape: bf16[128,128], index: 0, kind: input, shape index: {}]   ;;  %s1333_s1 = inlined_call_operand.hbm [shape: bf16[128,128], index: 1, kind: input, shape index: {}]   ;;  %s1334_s2 = inlined_call_operand.hbm [shape: bf16[128,128], index: 2, kind: input, shape index: {}]   ;;  %s1335_s3 = inlined_call_operand.hbm [shape: bf16[128,128], index: 3, kind: output, shape index: {0}]   ;;  %s1336_s4 = inlined_call_operand.hbm [shape: f32[1,2,128], index: 4, kind: output, shape index: {1}]   ;;  %s1337_s5 = inlined_call_operand.hbm [shape: bf16[128,128], index: 5, kind: output, shape index: {2}]   ;;  %s1338_s6 = inlined_call_operand.hbm [shape: f32[1,2,128], index: 6, kind: output, shape index: {3}]  }
   0x1   :  { %13 = vsyncpa [#allocation6], 0 }
   0x2   :  { %14 = vsyncpa [#allocation4], 0 }
   0x3   :  { %15 = vsyncpa [#allocation10], 0 }
   0x4   :  { %16 = vsyncpa [#allocation13], 0  ;;  %s1252_s21 = smov [#allocation5]   ;;  %s1253_s23 = smov [#allocation2]  }
   0x5   :  { %s34_s22 = sshll.u32 %s1252_s21, 4  ;;  %s22_s24 = sshll.u32 %s1253_s23, 4  ;;  %s35_s22 = int_to_ptr.vmem [resolvable:$true] %s34_s22  ;;  %s23_s24 = int_to_ptr.vmem [resolvable:$true] %s22_s24 }
   0x6   :  { %s1110_s25 = scalar_lea.vmem %s35_s22, 1024  ;;  %p1115_p1 = scmp.lt.s32.totalorder %s35_s22, %s35_s22 }
   0x7   :  { %p1111_p0 = scmp.ne.s32.totalorder %s35_s22, %s1110_s25  ;;  %p1116_p2 = scmp.lt.s32.totalorder %s1110_s25, %s1110_s25 }
   0x9   :  { %p1117_p3 = por %p1116_p2, %p1115_p1 }
   0xb   :  { %p1118_p4 = pnand %p1117_p3, %p1111_p0 }
   0xd   :  { %1121 = shalt.err (!%p1118_p4)
}
   0xe   :  { %s1254_s26 = smov 64   ;;  %s1255_s27 = smov 4  }
   0xf   :  { %40 = dma.hbm_to_vmem [thread:$0]  %s1333_s1, 1024, %s35_s22, [#allocation6], %s1254_s26, %s1254_s26, %s1255_s27  }
  0x10   :  { %s1130_s30 = scalar_lea.vmem %s23_s24, 1024  ;;  %p1135_p6 = scmp.lt.s32.totalorder %s23_s24, %s23_s24 }
  0x11   :  { %p1131_p5 = scmp.ne.s32.totalorder %s23_s24, %s1130_s30  ;;  %p1136_p7 = scmp.lt.s32.totalorder %s1130_s30, %s1130_s30 }
  0x13   :  { %p1137_p8 = por %p1136_p7, %p1135_p6 }
  0x15   :  { %p1138_p9 = pnand %p1137_p8, %p1131_p5 }
  0x17   :  { %1141 = shalt.err (!%p1138_p9)
}
  0x18   :  { %28 = dma.hbm_to_vmem [thread:$0]  %s1332_s0, 1024, %s23_s24, [#allocation3], %s1254_s26, %s1254_s26, %s1255_s27  }
  0x19   :  { %s1256_s9 = smov [#allocation7]  }
  0x1a   :  { %s46_s10 = sshll.u32 %s1256_s9, 4  ;;  %s47_s10 = int_to_ptr.vmem [resolvable:$true] %s46_s10 }
  0x1b   :  { %s1150_s11 = scalar_lea.vmem %s47_s10, 1024  ;;  %p1155_p11 = scmp.lt.s32.totalorder %s47_s10, %s47_s10 }
  0x1c   :  { %p1151_p10 = scmp.ne.s32.totalorder %s47_s10, %s1150_s11  ;;  %p1156_p12 = scmp.lt.s32.totalorder %s1150_s11, %s1150_s11 }
  0x1e   :  { %p1157_p13 = por %p1156_p12, %p1155_p11 }
  0x20   :  { %p1158_p0 = pnand %p1157_p13, %p1151_p10 }
  0x22   :  { %1161 = shalt.err (!%p1158_p0)
}
  0x23   :  { %52 = dma.hbm_to_vmem [thread:$0]  %s1334_s2, 1024, %s47_s10, [#allocation6], %s1254_s26, %s1254_s26, %s1255_s27  }
  0x24   :  { %1242 = dma.done.wait [#allocation3], 1024  }
  0x25   :  { %1243 = vsyncadd [#allocation3], 4294966272 }
  0x26   :  { %1244 = dma.done.wait [#allocation6], 2048  }
  0x27   :  { %1245 = vsyncadd [#allocation6], 4294965248  ;;  %v1078_v0 = vld [vmem:[#allocation5 + $0x38] sm:$0xff]   ;;  %v1080_v2 = vld [vmem:[#allocation5 + $0x30] sm:$0xff]   ;;  %s1257_s0 = smov [#allocation8]  }
  0x28   :  { %v1079_v1 = vld [vmem:[#allocation7 + $0x38] sm:$0xff]   ;;  %1005 = vmatprep.subr.bf16.mxu0 %v1078_v0  ;;  %v1081_v3 = vld [vmem:[#allocation7 + $0x30] sm:$0xff]   ;;  %v1082_v4 = vld [vmem:[#allocation5 + $0x28] sm:$0xff]   ;;  %s735_s2 = sshll.u32 %s1257_s0, 4  ;;  %s736_s2 = int_to_ptr.vmem [resolvable:$true] %s735_s2 }
  0x29   :  { %1037 = vmatprep.subr.bf16.mxu1 %v1079_v1  ;;  %1006 = vmatpush3.bf16.msra.mxu0 %v1078_v0  ;;  %v1083_v5 = vld [vmem:[#allocation7 + $0x28] sm:$0xff]   ;;  %v1084_v6 = vld [vmem:[#allocation5 + $0x20] sm:$0xff]   ;;  %v1086_v8 = vld [vmem:[#allocation5 + $0x18] sm:$0xff]   ;;  %s1162_s13 = scalar_lea.vmem %s736_s2, 1024  ;;  %p1167_p2 = scmp.lt.s32.totalorder %s736_s2, %s736_s2 }
  0x2a   :  { %1038 = vmatpush3.bf16.msra.mxu1 %v1079_v1  ;;  %1007 = vmatprep.subr.bf16.mxu0 %v1080_v2  ;;  %v1085_v7 = vld [vmem:[#allocation7 + $0x20] sm:$0xff]   ;;  %v1087_v9 = vld [vmem:[#allocation7 + $0x18] sm:$0xff]   ;;  %v1088_v10 = vld [vmem:[#allocation5 + $0x10] sm:$0xff]   ;;  %p1163_p1 = scmp.ne.s32.totalorder %s736_s2, %s1162_s13  ;;  %p1168_p3 = scmp.lt.s32.totalorder %s1162_s13, %s1162_s13 }
  0x2b   :  { %1039 = vmatprep.subr.bf16.mxu1 %v1081_v3  ;;  %v1094_v11 = vld [vmem:[#allocation2] sm:$0xff]   ;;  %v1089_v12 = vld [vmem:[#allocation7 + $0x10] sm:$0xff]   ;;  %v1090_v13 = vld [vmem:[#allocation5 + $0x8] sm:$0xff]  }
  0x2c   :  { %1021 = vmatprep.mubr.bf16.mxu0 %v1094_v11  ;;  %1053 = vmatprep.mubr.bf16.mxu1 %v1094_v11  ;;  %v1091_v14 = vld [vmem:[#allocation7 + $0x8] sm:$0xff]   ;;  %v1092_v15 = vld [vmem:[#allocation5] sm:$0xff]   ;;  %v1096_v18 = vld [vmem:[#allocation2 + $0x10] sm:$0xff]   ;;  %p1169_p4 = por %p1168_p3, %p1167_p2 }
  0x2d   :  { %1008 = vmatpush3.bf16.msra.mxu0 %v1080_v2  ;;  %v1093_v16 = vld [vmem:[#allocation7] sm:$0xff]   ;;  %v1095_v17 = vld [vmem:[#allocation2 + $0x8] sm:$0xff]   ;;  %v1097_v19 = vld [vmem:[#allocation2 + $0x18] sm:$0xff]  }
  0x2e   :  { %1040 = vmatpush3.bf16.msra.mxu1 %v1081_v3  ;;  %1009 = vmatprep.subr.bf16.mxu0 %v1082_v4  ;;  %v1098_v20 = vld [vmem:[#allocation2 + $0x20] sm:$0xff]   ;;  %v1099_v21 = vld [vmem:[#allocation2 + $0x28] sm:$0xff]   ;;  %v1100_v22 = vld [vmem:[#allocation2 + $0x30] sm:$0xff]   ;;  %p1170_p5 = pnand %p1169_p4, %p1163_p1 }
  0x2f   :  { %1041 = vmatprep.subr.bf16.mxu1 %v1083_v5  ;;  %v1101_v23 = vld [vmem:[#allocation2 + $0x38] sm:$0xff]  }
  0x31   :  { %1010 = vmatpush3.bf16.msra.mxu0 %v1082_v4 }
  0x32   :  { %1042 = vmatpush3.bf16.msra.mxu1 %v1083_v5  ;;  %1011 = vmatprep.subr.bf16.mxu0 %v1084_v6 }
  0x33   :  { %1043 = vmatprep.subr.bf16.mxu1 %v1085_v7 }
  0x35   :  { %1012 = vmatpush3.bf16.msra.mxu0 %v1084_v6 }
  0x36   :  { %1044 = vmatpush3.bf16.msra.mxu1 %v1085_v7  ;;  %1013 = vmatprep.subr.bf16.mxu0 %v1086_v8 }
  0x37   :  { %1045 = vmatprep.subr.bf16.mxu1 %v1087_v9 }
  0x39   :  { %1014 = vmatpush3.bf16.msra.mxu0 %v1086_v8 }
  0x3a   :  { %1046 = vmatpush3.bf16.msra.mxu1 %v1087_v9  ;;  %1015 = vmatprep.subr.bf16.mxu0 %v1088_v10 }
  0x3b   :  { %1047 = vmatprep.subr.bf16.mxu1 %v1089_v12 }
  0x3d   :  { %1016 = vmatpush3.bf16.msra.mxu0 %v1088_v10 }
  0x3e   :  { %1048 = vmatpush3.bf16.msra.mxu1 %v1089_v12  ;;  %1017 = vmatprep.subr.bf16.mxu0 %v1090_v13 }
  0x3f   :  { %1049 = vmatprep.subr.bf16.mxu1 %v1091_v14 }
  0x41   :  { %1018 = vmatpush3.bf16.msra.mxu0 %v1090_v13 }
  0x42   :  { %1050 = vmatpush3.bf16.msra.mxu1 %v1091_v14  ;;  %1019 = vmatprep.subr.bf16.mxu0 %v1092_v15 }
  0x43   :  { %1051 = vmatprep.subr.bf16.mxu1 %v1093_v16 }
  0x45   :  { %1020 = vmatpush3.bf16.msra.mxu0 %v1092_v15 }
  0x46   :  { %1052 = vmatpush3.bf16.msra.mxu1 %v1093_v16 }
  0x48   :  { %1022 = vmatmul.mubr.bf16.vlgmr.msra.gmra.mxu0 %v1095_v17 }
  0x49   :  { %1054 = vmatmul.mubr.bf16.vlgmr.msra.gmra.mxu1 %v1095_v17  ;;  %1025 = vmatprep.mubr.bf16.mxu0 %v1096_v18 }
  0x4a   :  { %1057 = vmatprep.mubr.bf16.mxu1 %v1096_v18 }
  0x50   :  { %1026 = vmatmul.mubr.bf16.gmra.mxu0 %v1097_v19 }
  0x51   :  { %1058 = vmatmul.mubr.bf16.gmra.mxu1 %v1097_v19  ;;  %1029 = vmatprep.mubr.bf16.mxu0 %v1098_v20 }
  0x52   :  { %1061 = vmatprep.mubr.bf16.mxu1 %v1098_v20 }
  0x58   :  { %1030 = vmatmul.mubr.bf16.gmra.mxu0 %v1099_v21 }
  0x59   :  { %1062 = vmatmul.mubr.bf16.gmra.mxu1 %v1099_v21  ;;  %1033 = vmatprep.mubr.bf16.mxu0 %v1100_v22 }
  0x5a   :  { %1065 = vmatprep.mubr.bf16.mxu1 %v1100_v22 }
  0x60   :  { %1034 = vmatmul.mubr.bf16.gmra.mxu0 %v1101_v23 }
  0x61   :  { %1066 = vmatmul.mubr.bf16.gmra.mxu1 %v1101_v23 }
 0x108   :  { %v1023_v24 = vpop.f32.mrf.mxu0 }
 0x109   :  { %v1055_v25 = vpop.f32.mrf.mxu1  ;;  %v391_v43 = vmul.f32 %v1023_v24, %v1023_v24 }
 0x10a   :  { %v225_v26 = vpop.f32.mrf.mxu0  ;;  %v693_v47 = vmul.f32 %v1055_v25, %v1055_v25 }
 0x10b   :  { %v527_v27 = vpop.f32.mrf.mxu1  ;;  %v389_v33 = vmul.f32 %v225_v26, %v225_v26 }
 0x10c   :  { %v1024_v28 = vpop.f32.mrf.mxu0  ;;  %v691_v38 = vmul.f32 %v527_v27, %v527_v27 }
 0x10d   :  { %v887_v29 = vpack.c.bf16 %v1024_v28, %v1023_v24  ;;  %v1056_v30 = vpop.f32.mrf.mxu1  ;;  %v392_v51 = vmul.f32 %v1024_v28, %v1024_v28 }
 0x10e   :  { %v927_v31 = vpack.c.bf16 %v1056_v30, %v1055_v25  ;;  %v228_v32 = vpop.f32.mrf.mxu0  ;;  %v694_v55 = vmul.f32 %v1056_v30, %v1056_v30 }
 0x10f   :  { %959 = vst [vmem:[#allocation8 + $0x8] sm:$0xff] %v887_v29   ;;  %v882_v34 = vpack.c.bf16 %v228_v32, %v225_v26  ;;  %v368_v35 = vadd.f32 %v228_v32, %v225_v26  ;;  %v390_v36 = vmul.f32 %v228_v32, %v228_v32  ;;  %v530_v37 = vpop.f32.mrf.mxu1 }
 0x110   :  { %966 = vst [vmem:[#allocation11 + $0x8] sm:$0xff] %v927_v31   ;;  %v922_v39 = vpack.c.bf16 %v530_v37, %v527_v27  ;;  %v670_v40 = vadd.f32 %v530_v37, %v527_v27  ;;  %v692_v41 = vmul.f32 %v530_v37, %v530_v37  ;;  %v1027_v42 = vpop.f32.mrf.mxu0 }
 0x111   :  { %883 = vst [vmem:[#allocation8] sm:$0xff] %v882_v34   ;;  %v369_v44 = vadd.f32 %v1023_v24, %v368_v35  ;;  %v405_v45 = vadd.f32 %v390_v36, %v389_v33  ;;  %v1059_v46 = vpop.f32.mrf.mxu1  ;;  %v395_v15 = vmul.f32 %v1027_v42, %v1027_v42 }
 0x112   :  { %923 = vst [vmem:[#allocation11] sm:$0xff] %v922_v39   ;;  %v671_v48 = vadd.f32 %v1055_v25, %v670_v40  ;;  %v707_v49 = vadd.f32 %v692_v41, %v691_v38  ;;  %v241_v50 = vpop.f32.mrf.mxu0  ;;  %v697_v19 = vmul.f32 %v1059_v46, %v1059_v46 }
 0x113   :  { %v406_v52 = vadd.f32 %v405_v45, %v391_v43  ;;  %v370_v53 = vadd.f32 %v1024_v28, %v369_v44  ;;  %v543_v54 = vpop.f32.mrf.mxu1  ;;  %v393_v60 = vmul.f32 %v241_v50, %v241_v50 }
 0x114   :  { %v708_v56 = vadd.f32 %v707_v49, %v693_v47  ;;  %v672_v57 = vadd.f32 %v1056_v30, %v671_v48  ;;  %v1028_v58 = vpop.f32.mrf.mxu0  ;;  %v695_v1 = vmul.f32 %v543_v54, %v543_v54 }
 0x115   :  { %v371_v59 = vadd.f32 %v370_v53, %v241_v50  ;;  %v407_v61 = vadd.f32 %v406_v52, %v392_v51  ;;  %v897_v62 = vpack.c.bf16 %v1028_v58, %v1027_v42  ;;  %v1060_v63 = vpop.f32.mrf.mxu1  ;;  %v396_v23 = vmul.f32 %v1028_v58, %v1028_v58 }
 0x116   :  { %v673_v0 = vadd.f32 %v672_v57, %v543_v54  ;;  %v709_v2 = vadd.f32 %v708_v56, %v694_v55  ;;  %v937_v3 = vpack.c.bf16 %v1060_v63, %v1059_v46  ;;  %v244_v4 = vpop.f32.mrf.mxu0  ;;  %v698_v27 = vmul.f32 %v1060_v63, %v1060_v63 }
 0x117   :  { %v408_v5 = vadd.f32 %v407_v61, %v393_v60  ;;  %961 = vst [vmem:[#allocation8 + $0x18] sm:$0xff] %v897_v62   ;;  %v892_v6 = vpack.c.bf16 %v244_v4, %v241_v50  ;;  %v372_v7 = vadd.f32 %v371_v59, %v244_v4  ;;  %v394_v8 = vmul.f32 %v244_v4, %v244_v4  ;;  %v546_v9 = vpop.f32.mrf.mxu1 }
 0x118   :  { %v710_v10 = vadd.f32 %v709_v2, %v695_v1  ;;  %968 = vst [vmem:[#allocation11 + $0x18] sm:$0xff] %v937_v3   ;;  %v932_v11 = vpack.c.bf16 %v546_v9, %v543_v54  ;;  %v674_v12 = vadd.f32 %v673_v0, %v546_v9  ;;  %v696_v13 = vmul.f32 %v546_v9, %v546_v9  ;;  %v1031_v14 = vpop.f32.mrf.mxu0 }
 0x119   :  { %960 = vst [vmem:[#allocation8 + $0x10] sm:$0xff] %v892_v6   ;;  %v373_v16 = vadd.f32 %v1027_v42, %v372_v7  ;;  %v409_v17 = vadd.f32 %v408_v5, %v394_v8  ;;  %v1063_v18 = vpop.f32.mrf.mxu1  ;;  %v399_v51 = vmul.f32 %v1031_v14, %v1031_v14 }
 0x11a   :  { %967 = vst [vmem:[#allocation11 + $0x10] sm:$0xff] %v932_v11   ;;  %v675_v20 = vadd.f32 %v1059_v46, %v674_v12  ;;  %v711_v21 = vadd.f32 %v710_v10, %v696_v13  ;;  %v257_v22 = vpop.f32.mrf.mxu0  ;;  %v701_v55 = vmul.f32 %v1063_v18, %v1063_v18 }
 0x11b   :  { %v410_v24 = vadd.f32 %v409_v17, %v395_v15  ;;  %v374_v25 = vadd.f32 %v1028_v58, %v373_v16  ;;  %v559_v26 = vpop.f32.mrf.mxu1  ;;  %v397_v32 = vmul.f32 %v257_v22, %v257_v22 }
 0x11c   :  { %v712_v28 = vadd.f32 %v711_v21, %v697_v19  ;;  %v676_v29 = vadd.f32 %v1060_v63, %v675_v20  ;;  %v1032_v30 = vpop.f32.mrf.mxu0  ;;  %v699_v37 = vmul.f32 %v559_v26, %v559_v26 }
 0x11d   :  { %v375_v31 = vadd.f32 %v374_v25, %v257_v22  ;;  %v411_v33 = vadd.f32 %v410_v24, %v396_v23  ;;  %v907_v34 = vpack.c.bf16 %v1032_v30, %v1031_v14  ;;  %v1064_v35 = vpop.f32.mrf.mxu1  ;;  %v400_v59 = vmul.f32 %v1032_v30, %v1032_v30 }
 0x11e   :  { %v677_v36 = vadd.f32 %v676_v29, %v559_v26  ;;  %v713_v38 = vadd.f32 %v712_v28, %v698_v27  ;;  %v947_v39 = vpack.c.bf16 %v1064_v35, %v1063_v18  ;;  %v260_v40 = vpop.f32.mrf.mxu0  ;;  %v702_v63 = vmul.f32 %v1064_v35, %v1064_v35 }
 0x11f   :  { %v412_v41 = vadd.f32 %v411_v33, %v397_v32  ;;  %963 = vst [vmem:[#allocation8 + $0x28] sm:$0xff] %v907_v34   ;;  %v902_v42 = vpack.c.bf16 %v260_v40, %v257_v22  ;;  %v376_v43 = vadd.f32 %v375_v31, %v260_v40  ;;  %v398_v44 = vmul.f32 %v260_v40, %v260_v40  ;;  %v562_v45 = vpop.f32.mrf.mxu1 }
 0x120   :  { %v714_v46 = vadd.f32 %v713_v38, %v699_v37  ;;  %970 = vst [vmem:[#allocation11 + $0x28] sm:$0xff] %v947_v39   ;;  %v942_v47 = vpack.c.bf16 %v562_v45, %v559_v26  ;;  %v678_v48 = vadd.f32 %v677_v36, %v562_v45  ;;  %v700_v49 = vmul.f32 %v562_v45, %v562_v45  ;;  %v1035_v50 = vpop.f32.mrf.mxu0 }
 0x121   :  { %962 = vst [vmem:[#allocation8 + $0x20] sm:$0xff] %v902_v42   ;;  %v377_v52 = vadd.f32 %v1031_v14, %v376_v43  ;;  %v413_v53 = vadd.f32 %v412_v41, %v398_v44  ;;  %v1067_v54 = vpop.f32.mrf.mxu1  ;;  %v403_v22 = vmul.f32 %v1035_v50, %v1035_v50 }
 0x122   :  { %969 = vst [vmem:[#allocation11 + $0x20] sm:$0xff] %v942_v47   ;;  %v679_v56 = vadd.f32 %v1063_v18, %v678_v48  ;;  %v715_v57 = vadd.f32 %v714_v46, %v700_v49  ;;  %v273_v58 = vpop.f32.mrf.mxu0  ;;  %v705_v25 = vmul.f32 %v1067_v54, %v1067_v54 }
 0x123   :  { %v414_v60 = vadd.f32 %v413_v53, %v399_v51  ;;  %v378_v61 = vadd.f32 %v1032_v30, %v377_v52  ;;  %v575_v62 = vpop.f32.mrf.mxu1  ;;  %v401_v4 = vmul.f32 %v273_v58, %v273_v58 }
 0x124   :  { %v716_v0 = vadd.f32 %v715_v57, %v701_v55  ;;  %v680_v1 = vadd.f32 %v1064_v35, %v679_v56  ;;  %v1036_v2 = vpop.f32.mrf.mxu0  ;;  %v703_v9 = vmul.f32 %v575_v62, %v575_v62 }
 0x125   :  { %v379_v3 = vadd.f32 %v378_v61, %v273_v58  ;;  %v415_v5 = vadd.f32 %v414_v60, %v400_v59  ;;  %v917_v6 = vpack.c.bf16 %v1036_v2, %v1035_v50  ;;  %v1068_v7 = vpop.f32.mrf.mxu1 }
 0x126   :  { %v681_v8 = vadd.f32 %v680_v1, %v575_v62  ;;  %v717_v10 = vadd.f32 %v716_v0, %v702_v63  ;;  %v957_v11 = vpack.c.bf16 %v1068_v7, %v1067_v54  ;;  %v276_v12 = vpop.f32.mrf.mxu0 }
 0x127   :  { %v416_v13 = vadd.f32 %v415_v5, %v401_v4  ;;  %965 = vst [vmem:[#allocation8 + $0x38] sm:$0xff] %v917_v6   ;;  %v912_v14 = vpack.c.bf16 %v276_v12, %v273_v58  ;;  %v380_v15 = vadd.f32 %v379_v3, %v276_v12  ;;  %v402_v16 = vmul.f32 %v276_v12, %v276_v12  ;;  %v578_v17 = vpop.f32.mrf.mxu1 }
 0x128   :  { %v718_v18 = vadd.f32 %v717_v10, %v703_v9  ;;  %972 = vst [vmem:[#allocation11 + $0x38] sm:$0xff] %v957_v11   ;;  %v952_v19 = vpack.c.bf16 %v578_v17, %v575_v62  ;;  %v682_v20 = vadd.f32 %v681_v8, %v578_v17  ;;  %v704_v21 = vmul.f32 %v578_v17, %v578_v17 }
 0x129   :  { %964 = vst [vmem:[#allocation8 + $0x30] sm:$0xff] %v912_v14   ;;  %v381_v23 = vadd.f32 %v1035_v50, %v380_v15  ;;  %v417_v24 = vadd.f32 %v416_v13, %v402_v16 }
 0x12a   :  { %971 = vst [vmem:[#allocation11 + $0x30] sm:$0xff] %v952_v19   ;;  %v683_v26 = vadd.f32 %v1067_v54, %v682_v20  ;;  %v719_v27 = vadd.f32 %v718_v18, %v704_v21 }
 0x12b   :  { %1173 = shalt.err (!%p1170_p5)
}
 0x12c   :  { %741 = dma.vmem_to_hbm [thread:$0]  %s736_s2, 1024, %s1335_s3, [#allocation4], %s1254_s26, %s1254_s26, %s1255_s27   ;;  %v404_v28 = vmul.f32 %v1036_v2, %v1036_v2  ;;  %v382_v29 = vadd.f32 %v1036_v2, %v381_v23  ;;  %v418_v30 = vadd.f32 %v417_v24, %v403_v22  ;;  %v706_v31 = vmul.f32 %v1068_v7, %v1068_v7 }
 0x12d   :  { %v684_v32 = vadd.f32 %v1068_v7, %v683_v26  ;;  %v720_v33 = vadd.f32 %v719_v27, %v705_v25  ;;  %s1258_s3 = smov [#allocation9]   ;;  %vm426_vm0 = vcmask 1040384   ;;  %s1259_s17 = smov [#allocation11]  }
 0x12e   :  { %v383_v34 = vrot.slane %v382_v29, 4  ;;  %v419_v35 = vadd.f32 %v418_v30, %v404_v28  ;;  %s748_s16 = sshll.u32 %s1258_s3, 4  ;;  %s757_s18 = sshll.u32 %s1259_s17, 4  ;;  %s749_s16 = int_to_ptr.vmem [resolvable:$true] %s748_s16  ;;  %s758_s18 = int_to_ptr.vmem [resolvable:$true] %s757_s18 }
 0x12f   :  { %v685_v36 = vrot.slane %v684_v32, 4  ;;  %v721_v37 = vadd.f32 %v720_v33, %v706_v31  ;;  %s1260_s19 = smov [#allocation12]   ;;  %s1182_s21 = scalar_lea.vmem %s749_s16, 32 }
 0x130   :  { %v384_v38 = vadd.f32 %v383_v34, %v382_v29  ;;  %v420_v39 = vrot.slane %v419_v35, 4  ;;  %s770_s20 = sshll.u32 %s1260_s19, 4  ;;  %p1183_p6 = scmp.ne.s32.totalorder %s749_s16, %s1182_s21  ;;  %s771_s20 = int_to_ptr.vmem [resolvable:$true] %s770_s20 }
 0x131   :  { %v686_v40 = vadd.f32 %v685_v36, %v684_v32  ;;  %v722_v41 = vrot.slane %v721_v37, 4  ;;  %p1187_p7 = scmp.lt.s32.totalorder %s749_s16, %s749_s16  ;;  %p1188_p8 = scmp.lt.s32.totalorder %s1182_s21, %s1182_s21 }
 0x132   :  { %v385_v42 = vrot.slane %v384_v38, 2  ;;  %v421_v43 = vadd.f32 %v420_v39, %v419_v35 }
 0x133   :  { %v687_v44 = vrot.slane %v686_v40, 2  ;;  %v723_v45 = vadd.f32 %v722_v41, %v721_v37  ;;  %p1189_p9 = por %p1188_p8, %p1187_p7 }
 0x134   :  { %v386_v46 = vadd.f32 %v385_v42, %v384_v38  ;;  %v422_v47 = vrot.slane %v421_v43, 2 }
 0x135   :  { %v688_v48 = vadd.f32 %v687_v44, %v686_v40  ;;  %v724_v49 = vrot.slane %v723_v45, 2  ;;  %p1190_p10 = pnand %p1189_p9, %p1183_p6 }
 0x136   :  { %v387_v50 = vrot.slane %v386_v46, 1  ;;  %v423_v51 = vadd.f32 %v422_v47, %v421_v43 }
 0x137   :  { %v689_v52 = vrot.slane %v688_v48, 1  ;;  %v725_v53 = vadd.f32 %v724_v49, %v723_v45 }
 0x138   :  { %v424_v54 = vrot.slane %v423_v51, 1  ;;  %v388_v56 = vadd.f32 %v387_v50, %v386_v46 }
 0x139   :  { %v726_v55 = vrot.slane %v725_v53, 1  ;;  %v690_v58 = vadd.f32 %v689_v52, %v688_v48 }
 0x13a   :  { %v425_v57 = vadd.f32 %v424_v54, %v423_v51 }
 0x13b   :  { %v727_v59 = vadd.f32 %v726_v55, %v725_v53 }
 0x13c   :  { %v427_v60 = vsel %vm426_vm0, %v388_v56, %v425_v57 }
 0x13d   :  { %428 = vst [vmem:[#allocation9] sm:$0x3] %v427_v60  ;;  %v728_v61 = vsel %vm426_vm0, %v690_v58, %v727_v59 }
 0x13e   :  { %1193 = shalt.err (!%p1190_p10)
}
 0x13f   :  { %751 = dma.vmem_to_hbm [thread:$0]  %s749_s16, 32, %s1336_s4, [#allocation10]   ;;  %729 = vst [vmem:[#allocation12] sm:$0x3] %v728_v61 }
 0x140   :  { %s1202_s24 = scalar_lea.vmem %s758_s18, 1024  ;;  %p1207_p12 = scmp.lt.s32.totalorder %s758_s18, %s758_s18 }
 0x141   :  { %p1203_p11 = scmp.ne.s32.totalorder %s758_s18, %s1202_s24  ;;  %p1208_p13 = scmp.lt.s32.totalorder %s1202_s24, %s1202_s24 }
 0x143   :  { %p1209_p0 = por %p1208_p13, %p1207_p12 }
 0x145   :  { %p1210_p1 = pnand %p1209_p0, %p1203_p11 }
 0x147   :  { %1213 = shalt.err (!%p1210_p1)
}
 0x148   :  { %763 = dma.vmem_to_hbm [thread:$0]  %s758_s18, 1024, %s1337_s5, [#allocation10], %s1254_s26, %s1254_s26, %s1255_s27  }
 0x149   :  { %s1222_s29 = scalar_lea.vmem %s771_s20, 32  ;;  %p1227_p3 = scmp.lt.s32.totalorder %s771_s20, %s771_s20 }
 0x14a   :  { %p1223_p2 = scmp.ne.s32.totalorder %s771_s20, %s1222_s29  ;;  %p1228_p4 = scmp.lt.s32.totalorder %s1222_s29, %s1222_s29 }
 0x14c   :  { %p1229_p5 = por %p1228_p4, %p1227_p3 }
 0x14e   :  { %p1230_p6 = pnand %p1229_p5, %p1223_p2 }
 0x150   :  { %1233 = shalt.err (!%p1230_p6)
}
 0x151   :  { %773 = dma.vmem_to_hbm [thread:$0]  %s771_s20, 32, %s1338_s6, [#allocation13]  }
 0x152   :  { %1246 = dma.done.wait [#allocation4], 1024  }
 0x153   :  { %1247 = vsyncadd [#allocation4], 4294966272 }
 0x154   :  { %1248 = dma.done.wait [#allocation10], 1056  }
 0x155   :  { %1249 = vsyncadd [#allocation10], 4294966240 }
 0x156   :  { %1250 = dma.done.wait [#allocation13], 32  }
 0x157   :  { %1251 = vsyncadd [#allocation13], 4294967264 }
 0x158   :  { %786 = vsyncpa [#allocation3], 1 }
 0x159   :  { %787 = vsyncpa [#allocation6], 1 }
 0x15a   :  { %788 = vsyncpa [#allocation4], 1 }
 0x15b   :  { %789 = vsyncpa [#allocation10], 1 }
 0x15c   :  { %790 = vsyncpa [#allocation13], 1 }

</bundles_post_ra>
